<compile_context>
chip_gen: v7x
topology: tpu7x:2x2x1
jax: 0.10.0
libtpu: 0.0.40
codegen_flags: <defaults>
</compile_context>

<pallas_src>
import jax
import jax.numpy as jnp
from jax.experimental import pallas as pl
from jax.experimental.pallas import tpu as pltpu


# ----------------------------- helpers ---------------------------------------


def _round_up(x, m):
    return ((x + m - 1) // m) * m


def _vmem_cap_bytes():
    """Usable per-core VMEM budget, generation aware, with compiler headroom."""
    cap = 64 << 20  # conservative default (v7x per-TC physical)
    try:
        cap = int(getattr(pltpu.get_tpu_info(), "vmem_capacity_bytes", cap))
    except Exception:
        pass
    return int(min(max(cap - (12 << 20), 16 << 20), 112 << 20))


# ----------------------------- kernels ---------------------------------------


def _fused_kernel(a_ref, org_ref, x_ref, w_ref, cb_ref, b1_ref, o_ref):
    """Small-N path: everything resident.  out = relu(origin @ (A_hat @ (x@w) + cb) + b1)."""
    xw = jnp.dot(x_ref[...].astype(jnp.bfloat16), w_ref[...].astype(jnp.bfloat16),
                 preferred_element_type=jnp.float32)
    h = jnp.dot(a_ref[...].astype(jnp.bfloat16), xw.astype(jnp.bfloat16),
                preferred_element_type=jnp.float32) + cb_ref[...]
    s = jnp.dot(org_ref[...].astype(jnp.bfloat16), h.astype(jnp.bfloat16),
                preferred_element_type=jnp.float32) + b1_ref[...]
    o_ref[...] = jnp.maximum(s, 0.0)


def _make_mm_kernel(*, relu, tk, b_resident):
    """out[i] = act(sum_k a[i,k] @ b[k] + bias).  Accumulates directly into o_ref (f32),
    which is resident across the k axis.  b may be fully VMEM-resident (sliced by k)."""

    def kernel(a_ref, b_ref, bias_ref, o_ref):
        k = pl.program_id(1)

        @pl.when(k == 0)
        def _init():
            o_ref[...] = jnp.zeros_like(o_ref)

        if b_resident:
            start = pl.multiple_of(k * tk, tk)
            b_tile = b_ref[pl.ds(start, tk), :]
        else:
            b_tile = b_ref[...]

        o_ref[...] += jnp.dot(
            a_ref[...].astype(jnp.bfloat16),       # f32 HBM tile -> bf16 MXU input
            b_tile.astype(jnp.bfloat16),
            preferred_element_type=jnp.float32,
        )

        @pl.when(k == pl.num_programs(1) - 1)
        def _finalize():
            v = o_ref[...] + bias_ref[...]
            if relu:
                v = jnp.maximum(v, 0.0)
            o_ref[...] = v

    return kernel


# ----------------------------- tiled stage -----------------------------------


def _matmul_bias_act(a, b, bias, *, relu, tm, tk, vmem_cap):
    """act(a @ b + bias) for a:(Np,Np) float, b:(Np,Fp), bias:(1,Fp) -> (Np,Fp) f32."""
    Np = a.shape[0]
    Fp = b.shape[1]
    a_eb = jnp.dtype(a.dtype).itemsize
    b_eb = jnp.dtype(b.dtype).itemsize

    # Keep the small (Np, Fp) operand fully resident when it fits comfortably;
    # otherwise fall back to a k-tiled spec.
    b_resident = (2 * Np * Fp * b_eb) <= (vmem_cap // 3)
    if b_resident:
        b_spec = pl.BlockSpec((Np, Fp), lambda i, k: (0, 0))
        b_vmem = 2 * Np * Fp * b_eb
    else:
        b_spec = pl.BlockSpec((tk, Fp), lambda i, k: (k, 0))
        b_vmem = 2 * tk * Fp * b_eb

    est = 2 * tm * tk * a_eb + b_vmem + 2 * Fp * 4 + 2 * tm * Fp * 4
    vmem_limit = int(min(max(est + (8 << 20), 32 << 20), vmem_cap))

    grid = (Np // tm, Np // tk)
    kernel = _make_mm_kernel(relu=relu, tk=tk, b_resident=b_resident)

    return pl.pallas_call(
        kernel,
        out_shape=jax.ShapeDtypeStruct((Np, Fp), jnp.float32),
        grid_spec=pltpu.PrefetchScalarGridSpec(
            num_scalar_prefetch=0,
            grid=grid,
            in_specs=[
                pl.BlockSpec((tm, tk), lambda i, k: (i, k)),   # big f32 operand
                b_spec,                                        # xw / h
                pl.BlockSpec((1, Fp), lambda i, k: (0, 0)),    # bias (lane-dense)
            ],
            out_specs=pl.BlockSpec((tm, Fp), lambda i, k: (i, 0)),
        ),
        compiler_params=pltpu.CompilerParams(
            dimension_semantics=("parallel", "arbitrary"),
            vmem_limit_bytes=vmem_limit,
        ),
    )(a, b, bias)


# ----------------------------- forward wrapper --------------------------------


def gcn_forward(shuf, origin, a_hat, w, conv_b, bias_1, *, force_tiled=False):
    """shuf: (1,N,Fin), origin: (1,N,N), a_hat: (N,N), w: (Fin,Fout),
    conv_b/bias_1: (Fout,)|(1,Fout)  ->  (1, N, Fout) float32."""
    # TODO(synk): batch dim is 1 (DGI-style); B>1 would add a leading grid axis.
    x = shuf[0]
    org = origin[0]
    N, Fin = x.shape
    Fout = w.shape[1]
    Fp = _round_up(Fout, 128)   # lane-dense feature dim
    pf = Fp - Fout
    vmem_cap = _vmem_cap_bytes()

    cb = conv_b.reshape(1, -1).astype(jnp.float32)
    b1 = bias_1.reshape(1, -1).astype(jnp.float32)
    cb_p = jnp.pad(cb, ((0, 0), (0, pf))) if pf else cb
    b1_p = jnp.pad(b1, ((0, 0), (0, pf))) if pf else b1
    w_p = (jnp.pad(w, ((0, 0), (0, pf))) if pf else w).astype(jnp.float32)

    # ---------------- fused fast path (small N: everything resident in VMEM) ----------
    Nf = _round_up(N, 128)
    fused_bytes = 12 * Nf * Nf + 4 * Nf * (Fin + 3 * Fp) + (1 << 20)
    if not force_tiled and fused_bytes <= vmem_cap - (4 << 20):
        pn = Nf - N
        x_f = jnp.pad(x, ((0, pn), (0, 0))) if pn else x
        a_f = jnp.pad(a_hat, ((0, pn), (0, pn))) if pn else a_hat
        org_f = jnp.pad(org, ((0, pn), (0, pn))) if pn else org
        out_p = pl.pallas_call(
            _fused_kernel,
            out_shape=jax.ShapeDtypeStruct((Nf, Fp), jnp.float32),
            compiler_params=pltpu.CompilerParams(
                vmem_limit_bytes=int(min(max(2 * fused_bytes, 32 << 20), vmem_cap)),
            ),
        )(a_f, org_f, x_f, w_p, cb_p, b1_p)
        return out_p[:N, :Fout][None]

    # ---------------- tiled path (large N) --------------------------------------------
    # Big tiles (HBM-bandwidth bound); all choices keep >=2 row steps for N > 128.
    if N >= 4096:
        tm, tk = 512, 1024
    elif N >= 1024:
        tm, tk = 512, 512
    elif N >= 256:
        tm, tk = 256, 256
    else:
        tm, tk = 128, 128
    Np = _round_up(N, max(tm, tk))
    pn = Np - N

    # a_hat / origin stay in their input dtype (f32); cast to bf16 per-tile in-kernel.
    a_p = jnp.pad(a_hat, ((0, pn), (0, pn))) if pn else a_hat
    org_p = jnp.pad(org, ((0, pn), (0, pn))) if pn else org

    # Tiny projection x @ W done by XLA (bf16 MXU inputs, f32 acc), padded lane-dense.
    xw = jnp.dot(x.astype(jnp.bfloat16), w_p.astype(jnp.bfloat16),
                 preferred_element_type=jnp.float32)
    xw_p = (jnp.pad(xw, ((0, pn), (0, 0))) if pn else xw).astype(jnp.bfloat16)

    # Stage 1: h = A_hat @ XW + conv_b     (padded a_hat rows give h rows == conv_b,
    # which only ever multiply zero columns of padded origin -> exact after slicing)
    h = _matmul_bias_act(a_p, xw_p, cb_p, relu=False, tm=tm, tk=tk, vmem_cap=vmem_cap)

    # Stage 2: out = relu(origin @ h + bias_1)
    out_p = _matmul_bias_act(org_p, h, b1_p, relu=True, tm=tm, tk=tk, vmem_cap=vmem_cap)

    return out_p[:N, :Fout][None]


# ----------------------------- references / glue -------------------------------


def build_normalized_adjacency(edge_index, num_nodes):
    """Dense D^-1/2 (A + I) D^-1/2 from edge_index (2, E) -- plain-JAX glue."""
    src, dst = edge_index[0], edge_index[1]
    adj = jnp.zeros((num_nodes, num_nodes), jnp.float32)
    adj = adj.at[src, dst].set(1.0)
    adj = adj + jnp.eye(num_nodes, dtype=jnp.float32)  # self-loops
    deg = jnp.sum(adj, axis=1)
    d_inv_sqrt = jnp.where(deg > 0, 1.0 / jnp.sqrt(deg), 0.0)
    return d_inv_sqrt[:, None] * adj * d_inv_sqrt[None, :]


def reference_forward_f32(shuf, origin, a_hat, w, conv_b, bias_1):
    h = a_hat @ (shuf[0] @ w) + conv_b.reshape(1, -1)
    s = origin[0] @ h + bias_1.reshape(1, -1)
    return jnp.maximum(s, 0.0)[None]


def reference_forward_mixed(shuf, origin, a_hat, w, conv_b, bias_1):
    """Mirrors the kernel's precision: bf16 MXU inputs, f32 accumulation."""
    xw = jnp.dot(shuf[0].astype(jnp.bfloat16), w.astype(jnp.bfloat16),
                 preferred_element_type=jnp.float32)
    h = jnp.dot(a_hat.astype(jnp.bfloat16), xw.astype(jnp.bfloat16),
                preferred_element_type=jnp.float32) + conv_b.reshape(1, -1)
    s = jnp.dot(origin[0].astype(jnp.bfloat16), h.astype(jnp.bfloat16),
                preferred_element_type=jnp.float32) + bias_1.reshape(1, -1)
    return jnp.maximum(s, 0.0)[None]


if __name__ == "__main__":
    key = jax.random.PRNGKey(0)
    N, IN_FT, OUT_FT = 128, 32, 64

    k_x, k_org, k_w = jax.random.split(key, 3)

    # Deterministic synthetic inputs (instead of the module's .pt edge-index files).
    shuf = jax.random.normal(k_x, (1, N, IN_FT), jnp.float32)
    origin = jax.random.normal(k_org, (1, N, N), jnp.float32)

    idx = jnp.arange(N, dtype=jnp.int32)
    edge_index = jnp.concatenate(
        [jnp.stack([idx, (idx + 1) % N]), jnp.stack([(idx + 1) % N, idx])], axis=1
    )  # (2, 2N) ring graph
    a_hat = build_normalized_adjacency(edge_index, N)

    # GCNConv weight: xavier/glorot uniform; biases zero (as in the module).
    bound = (6.0 / (IN_FT + OUT_FT)) ** 0.5
    w = jax.random.uniform(k_w, (IN_FT, OUT_FT), jnp.float32, -bound, bound)
    conv_b = jnp.zeros((OUT_FT,), jnp.float32)   # GCNConv bias
    bias_1 = jnp.zeros((OUT_FT,), jnp.float32)   # module's Bias=True parameter

    ref_mixed = reference_forward_mixed(shuf, origin, a_hat, w, conv_b, bias_1)
    ref_f32 = reference_forward_f32(shuf, origin, a_hat, w, conv_b, bias_1)

    # Fused (small-N) path — the one implied by these shapes.
    out = gcn_forward(shuf, origin, a_hat, w, conv_b, bias_1)
    out = jax.block_until_ready(out)
    assert out.shape == (1, N, OUT_FT)
    assert jnp.allclose(out, ref_mixed, atol=3e-2, rtol=1e-2), \
        float(jnp.max(jnp.abs(out - ref_mixed)))
    assert jnp.allclose(out, ref_f32, atol=0.5, rtol=0.1)

    # Also exercise the tiled (large-N) path at these small shapes.
    out_t = gcn_forward(shuf, origin, a_hat, w, conv_b, bias_1, force_tiled=True)
    out_t = jax.block_until_ready(out_t)
    assert out_t.shape == (1, N, OUT_FT)
    assert jnp.allclose(out_t, ref_mixed, atol=3e-2, rtol=1e-2), \
        float(jnp.max(jnp.abs(out_t - ref_mixed)))
    assert jnp.allclose(out_t, ref_f32, atol=0.5, rtol=0.1)

    print("KERNEL_OK")
</pallas_src>

<mosaic_0001>
module attributes {stable_mosaic.version = 11 : i64} {
  func.func @_fused_kernel(%arg0: memref<128x128xf32, #tpu.memory_space<vmem>>, %arg1: memref<128x128xf32, #tpu.memory_space<vmem>>, %arg2: memref<128x32xf32, #tpu.memory_space<vmem>>, %arg3: memref<32x128xf32, #tpu.memory_space<vmem>>, %arg4: memref<1x128xf32, #tpu.memory_space<vmem>>, %arg5: memref<1x128xf32, #tpu.memory_space<vmem>>, %arg6: memref<128x128xf32, #tpu.memory_space<vmem>>) attributes {dimension_semantics = [], scalar_prefetch = 0 : i64, scratch_operands = 0 : i64, tpu.core_type = #tpu.core_type<tc>} {
    %c0 = arith.constant 0 : index
    %c0_0 = arith.constant 0 : index
    %0 = vector.load %arg2[%c0, %c0_0] : memref<128x32xf32, #tpu.memory_space<vmem>>, vector<128x32xf32>
    %1 = arith.truncf %0 : vector<128x32xf32> to vector<128x32xbf16>
    %c0_1 = arith.constant 0 : index
    %c0_2 = arith.constant 0 : index
    %2 = vector.load %arg3[%c0_1, %c0_2] : memref<32x128xf32, #tpu.memory_space<vmem>>, vector<32x128xf32>
    %3 = arith.truncf %2 : vector<32x128xf32> to vector<32x128xbf16>
    %cst = arith.constant dense<0.000000e+00> : vector<128x128xf32>
    %4 = tpu.matmul %1, %3, %cst {dimension_numbers = #tpu.dot_dimension_numbers<[1], [0], [0], [1], [0, 0, 1, 1], [], []>} : vector<128x32xbf16>, vector<32x128xbf16>, vector<128x128xf32> -> vector<128x128xf32>
    %c0_3 = arith.constant 0 : index
    %c0_4 = arith.constant 0 : index
    %5 = vector.load %arg0[%c0_3, %c0_4] : memref<128x128xf32, #tpu.memory_space<vmem>>, vector<128x128xf32>
    %6 = arith.truncf %5 : vector<128x128xf32> to vector<128x128xbf16>
    %7 = arith.truncf %4 : vector<128x128xf32> to vector<128x128xbf16>
    %cst_5 = arith.constant dense<0.000000e+00> : vector<128x128xf32>
    %8 = tpu.matmul %6, %7, %cst_5 {dimension_numbers = #tpu.dot_dimension_numbers<[1], [0], [0], [1], [0, 0, 1, 1], [], []>} : vector<128x128xbf16>, vector<128x128xbf16>, vector<128x128xf32> -> vector<128x128xf32>
    %c0_6 = arith.constant 0 : index
    %c0_7 = arith.constant 0 : index
    %9 = vector.load %arg4[%c0_6, %c0_7] : memref<1x128xf32, #tpu.memory_space<vmem>>, vector<1x128xf32>
    %10 = vector.broadcast %9 : vector<1x128xf32> to vector<128x128xf32>
    %11 = arith.addf %8, %10 : vector<128x128xf32>
    %c0_8 = arith.constant 0 : index
    %c0_9 = arith.constant 0 : index
    %12 = vector.load %arg1[%c0_8, %c0_9] : memref<128x128xf32, #tpu.memory_space<vmem>>, vector<128x128xf32>
    %13 = arith.truncf %12 : vector<128x128xf32> to vector<128x128xbf16>
    %14 = arith.truncf %11 : vector<128x128xf32> to vector<128x128xbf16>
    %cst_10 = arith.constant dense<0.000000e+00> : vector<128x128xf32>
    %15 = tpu.matmul %13, %14, %cst_10 {dimension_numbers = #tpu.dot_dimension_numbers<[1], [0], [0], [1], [0, 0, 1, 1], [], []>} : vector<128x128xbf16>, vector<128x128xbf16>, vector<128x128xf32> -> vector<128x128xf32>
    %c0_11 = arith.constant 0 : index
    %c0_12 = arith.constant 0 : index
    %16 = vector.load %arg5[%c0_11, %c0_12] : memref<1x128xf32, #tpu.memory_space<vmem>>, vector<1x128xf32>
    %17 = vector.broadcast %16 : vector<1x128xf32> to vector<128x128xf32>
    %18 = arith.addf %15, %17 : vector<128x128xf32>
    %cst_13 = arith.constant 0.000000e+00 : f32
    %19 = vector.broadcast %cst_13 : f32 to vector<128x128xf32>
    %20 = arith.maximumf %18, %19 : vector<128x128xf32>
    %c0_14 = arith.constant 0 : index
    %c0_15 = arith.constant 0 : index
    %21 = vector.load %arg6[%c0_14, %c0_15] : memref<128x128xf32, #tpu.memory_space<vmem>>, vector<128x128xf32>
    tpu.vector_store %arg6[%c0_14, %c0_15], %20 {strides = array<i32>} : memref<128x128xf32, #tpu.memory_space<vmem>>, vector<128x128xf32>,
    return
  }
}

</mosaic_0001>

<bundles_post_ra>
// kernel: tpu_custom_call.1
= control target key start
LH: loop header
LB: loop body
LE: loop exit
PB: predicated region body
PF: predicated region fallthrough
CT: control target
= control target key end

     0   :  { %11 = vsyncpa [#allocation3], 0  ;;  %s891_s0 = inlined_call_operand.vmem [shape: f32[128,128], index: 0, kind: input, shape index: {}]   ;;  %s892_s1 = inlined_call_operand.hbm [shape: f32[128,128], index: 1, kind: input, shape index: {}]   ;;  %s893_s2 = inlined_call_operand.vmem [shape: f32[128,32], index: 2, kind: input, shape index: {}]   ;;  %s894_s3 = inlined_call_operand.vmem [shape: f32[32,128], index: 3, kind: input, shape index: {}]   ;;  %s895_s4 = inlined_call_operand.vmem [shape: f32[1,128], index: 4, kind: input, shape index: {}]   ;;  %s896_s5 = inlined_call_operand.vmem [shape: f32[1,128], index: 5, kind: input, shape index: {}]   ;;  %s897_s6 = inlined_call_operand.hbm [shape: f32[128,128], index: 6, kind: output, shape index: {}]  }
   0x1   :  { %12 = vsyncpa [#allocation4], 0  ;;  %s700_s21 = smov [#allocation2]   ;;  %s652_s25 = scalar_lea.hbm %s892_s1, 2048 }
   0x2   :  { %s20_s22 = sshll.u32 %s700_s21, 4  ;;  %p653_p0 = scmp.ne.s32.totalorder %s892_s1, %s652_s25  ;;  %s21_s22 = int_to_ptr.vmem [resolvable:$true] %s20_s22 }
   0x3   :  { %p656_p1 = scmp.lt.u32.totalorder %s652_s25, %s892_s1 }
   0x5   :  { %p658_p2 = pnand %p656_p1, %p653_p0 }
   0x7   :  { %661 = shalt.err (!%p658_p2)
}
   0x8   :  { %s662_s30 = scalar_lea.vmem %s21_s22, 2048  ;;  %p667_p4 = scmp.lt.s32.totalorder %s21_s22, %s21_s22 }
   0x9   :  { %p663_p3 = scmp.ne.s32.totalorder %s21_s22, %s662_s30  ;;  %p668_p5 = scmp.lt.s32.totalorder %s662_s30, %s662_s30 }
   0xb   :  { %p669_p6 = por %p668_p5, %p667_p4 }
   0xd   :  { %p670_p7 = pnand %p669_p6, %p663_p3 }
   0xf   :  { %673 = shalt.err (!%p670_p7)
}
  0x10   :  { %s701_s7 = smov 128   ;;  %s702_s8 = smov 8  }
  0x11   :  { %26 = dma.hbm_to_vmem [thread:$0]  %s892_s1, 2048, %s21_s22, [#allocation3], %s701_s7, %s701_s7, %s702_s8  }
  0x12   :  { %696 = dma.done.wait [#allocation3], 2048  }
  0x13   :  { %697 = vsyncadd [#allocation3], 4294965248  ;;  %v63_v0 = vld [vmem:[%s894_s3] sm:$0xff]  ;;  %v64_v1 = vld [vmem:[%s894_s3 + $0x8] sm:$0xff]  ;;  %vm69_vm0 = vcmask 261120  }
  0x14   :  { %v65_v2 = vld [vmem:[%s894_s3 + $0x10] sm:$0xff]  ;;  %v67_v3 = vpack.c.bf16 %v64_v1, %v63_v0  ;;  %v66_v4 = vld [vmem:[%s894_s3 + $0x18] sm:$0xff]  ;;  %v39_v5 = vld [vmem:[%s893_s2] sm:$0xff] }
  0x15   :  { %v40_v6 = vld [vmem:[%s893_s2 + $0x8] sm:$0xff]  ;;  %v68_v7 = vpack.c.bf16 %v66_v4, %v65_v2  ;;  %v41_v9 = vld [vmem:[%s893_s2 + $0x10] sm:$0xff]  ;;  %v42_v10 = vld [vmem:[%s893_s2 + $0x18] sm:$0xff] }
  0x16   :  { %v55_v8 = vpack.c.bf16 %v40_v6, %v39_v5  ;;  %564 = vmatprep.subr.bf16.mxu0 %v67_v3  ;;  %v43_v11 = vld [vmem:[%s893_s2 + $0x20] sm:$0xff]  ;;  %v44_v12 = vld [vmem:[%s893_s2 + $0x28] sm:$0xff]  ;;  %v56_v13 = vpack.c.bf16 %v42_v10, %v41_v9  ;;  %v45_v15 = vld [vmem:[%s893_s2 + $0x30] sm:$0xff] }
  0x17   :  { %565 = vmatpush3.bf16.msra.mxu0 %v67_v3  ;;  %v57_v14 = vpack.c.bf16 %v44_v12, %v43_v11  ;;  %v46_v16 = vld [vmem:[%s893_s2 + $0x38] sm:$0xff]  ;;  %v47_v17 = vld [vmem:[%s893_s2 + $0x40] sm:$0xff]  ;;  %v48_v18 = vld [vmem:[%s893_s2 + $0x48] sm:$0xff] }
  0x18   :  { %568 = vmatprep.mubr.msk.bf16.mxu0 %vm69_vm0, %v55_v8  ;;  %566 = vmatprep.subr.bf16.mxu0 %v68_v7  ;;  %v58_v19 = vpack.c.bf16 %v46_v16, %v45_v15  ;;  %v59_v20 = vpack.c.bf16 %v48_v18, %v47_v17  ;;  %v49_v21 = vld [vmem:[%s893_s2 + $0x50] sm:$0xff]  ;;  %v50_v22 = vld [vmem:[%s893_s2 + $0x58] sm:$0xff]  ;;  %v51_v23 = vld [vmem:[%s893_s2 + $0x60] sm:$0xff] }
  0x19   :  { %v52_v24 = vld [vmem:[%s893_s2 + $0x68] sm:$0xff]  ;;  %v60_v25 = vpack.c.bf16 %v50_v22, %v49_v21  ;;  %v53_v27 = vld [vmem:[%s893_s2 + $0x70] sm:$0xff]  ;;  %v54_v28 = vld [vmem:[%s893_s2 + $0x78] sm:$0xff] }
  0x1a   :  { %v61_v26 = vpack.c.bf16 %v52_v24, %v51_v23  ;;  %v62_v29 = vpack.c.bf16 %v54_v28, %v53_v27  ;;  %v191_v30 = vld [vmem:[%s891_s0] sm:$0xff]  ;;  %v192_v31 = vld [vmem:[%s891_s0 + $0x8] sm:$0xff]  ;;  %v193_v57 = vld [vmem:[%s891_s0 + $0x10] sm:$0xff] }
  0x1b   :  { %567 = vmatpush3.bf16.msra.mxu0 %v68_v7  ;;  %v207_v32 = vpack.c.bf16 %v192_v31, %v191_v30  ;;  %v194_v58 = vld [vmem:[%s891_s0 + $0x18] sm:$0xff]  ;;  %v195_v59 = vld [vmem:[%s891_s0 + $0x20] sm:$0xff]  ;;  %v196_v60 = vld [vmem:[%s891_s0 + $0x28] sm:$0xff] }
  0x1c   :  { %v208_v61 = vpack.c.bf16 %v194_v58, %v193_v57  ;;  %v209_v62 = vpack.c.bf16 %v196_v60, %v195_v59  ;;  %v197_v63 = vld [vmem:[%s891_s0 + $0x30] sm:$0xff]  ;;  %v198_v0 = vld [vmem:[%s891_s0 + $0x38] sm:$0xff]  ;;  %v199_v1 = vld [vmem:[%s891_s0 + $0x40] sm:$0xff] }
  0x1d   :  { %600 = vmatprep.mubr.bf16.mxu1 %v207_v32  ;;  %v200_v2 = vld [vmem:[%s891_s0 + $0x48] sm:$0xff]  ;;  %v210_v3 = vpack.c.bf16 %v198_v0, %v197_v63  ;;  %v201_v5 = vld [vmem:[%s891_s0 + $0x50] sm:$0xff]  ;;  %v202_v6 = vld [vmem:[%s891_s0 + $0x58] sm:$0xff] }
  0x1e   :  { %569 = vmatmul.mubr.msk.bf16.vlgmr.msra.gmra.mrb[0].mxu0 %vm69_vm0, %v56_v13  ;;  %v211_v4 = vpack.c.bf16 %v200_v2, %v199_v1  ;;  %v203_v7 = vld [vmem:[%s891_s0 + $0x60] sm:$0xff]  ;;  %v204_v8 = vld [vmem:[%s891_s0 + $0x68] sm:$0xff]  ;;  %v212_v9 = vpack.c.bf16 %v202_v6, %v201_v5  ;;  %v205_v11 = vld [vmem:[%s891_s0 + $0x70] sm:$0xff] }
  0x1f   :  { %572 = vmatprep.mubr.msk.bf16.mxu0 %vm69_vm0, %v57_v14  ;;  %v213_v10 = vpack.c.bf16 %v204_v8, %v203_v7  ;;  %v206_v12 = vld [vmem:[%s891_s0 + $0x78] sm:$0xff]  ;;  %v327_v14 = vld [vmem:[#allocation2] sm:$0xff]  ;;  %v328_v15 = vld [vmem:[#allocation2 + $0x8] sm:$0xff] }
  0x20   :  { %v214_v13 = vpack.c.bf16 %v206_v12, %v205_v11  ;;  %v343_v16 = vpack.c.bf16 %v328_v15, %v327_v14  ;;  %v520_v18 = vld [vmem:[%s895_s4] ss:$0 sm:$0xff]  ;;  %v329_v58 = vld [vmem:[#allocation2 + $0x10] sm:$0xff]  ;;  %v330_v59 = vld [vmem:[#allocation2 + $0x18] sm:$0xff] }
  0x21   :  { %v331_v60 = vld [vmem:[#allocation2 + $0x20] sm:$0xff]  ;;  %v333_v0 = vld [vmem:[#allocation2 + $0x30] sm:$0xff]  ;;  %v334_v1 = vld [vmem:[#allocation2 + $0x38] sm:$0xff] }
  0x22   :  { %v335_v2 = vld [vmem:[#allocation2 + $0x40] sm:$0xff]  ;;  %v337_v6 = vld [vmem:[#allocation2 + $0x50] sm:$0xff]  ;;  %v338_v7 = vld [vmem:[#allocation2 + $0x58] sm:$0xff] }
  0x23   :  { %v339_v8 = vld [vmem:[#allocation2 + $0x60] sm:$0xff]  ;;  %v341_v12 = vld [vmem:[#allocation2 + $0x70] sm:$0xff] }
  0x24   :  { %v521_v15 = vld [vmem:[%s896_s5] ss:$0 sm:$0xff]  ;;  %s703_s5 = smov [#allocation5]  }
  0x25   :  { %s500_s11 = sshll.u32 %s703_s5, 4  ;;  %s501_s11 = int_to_ptr.vmem [resolvable:$true] %s500_s11 }
  0x26   :  { %573 = vmatmul.mubr.msk.bf16.gmra.mrb[4].mxu0 %vm69_vm0, %v58_v19  ;;  %s674_s12 = scalar_lea.vmem %s501_s11, 2048  ;;  %p679_p9 = scmp.lt.s32.totalorder %s501_s11, %s501_s11 }
  0x27   :  { %576 = vmatprep.mubr.msk.bf16.mxu0 %vm69_vm0, %v59_v20  ;;  %p675_p8 = scmp.ne.s32.totalorder %s501_s11, %s674_s12  ;;  %p680_p10 = scmp.lt.s32.totalorder %s674_s12, %s674_s12 }
  0x29   :  { %p681_p11 = por %p680_p10, %p679_p9 }
  0x2b   :  { %p682_p12 = pnand %p681_p11, %p675_p8 }
  0x2e   :  { %577 = vmatmul.mubr.msk.bf16.gmra.mrb[8].mxu0 %vm69_vm0, %v60_v25 }
  0x2f   :  { %580 = vmatprep.mubr.msk.bf16.mxu0 %vm69_vm0, %v61_v26 }
  0x36   :  { %581 = vmatmul.mubr.msk.bf16.gmra.mrb[12].mxu0 %vm69_vm0, %v62_v29 }
  0x37   :  { %632 = vmatprep.mubr.bf16.mxu0 %v343_v16 }
  0xf1   :  { %v570_v33 = vpop.f32.mrb[0].mxu0 }
  0xf2   :  { %v128_v34 = vpop.f32.mrb[1].mxu0 }
  0xf3   :  { %v571_v35 = vpop.f32.mrb[2].mxu0 }
  0xf4   :  { %v216_v36 = vpack.c.bf16 %v571_v35, %v570_v33  ;;  %v131_v37 = vpop.f32.mrb[3].mxu0 }
  0xf5   :  { %v215_v38 = vpack.c.bf16 %v131_v37, %v128_v34 }
  0xf7   :  { %584 = vmatprep.subr.bf16.mxu1 %v215_v38 }
  0xf8   :  { %585 = vmatpush3.bf16.msra.mxu1 %v215_v38 }
  0xf9   :  { %v574_v39 = vpop.f32.mrb[4].mxu0  ;;  %586 = vmatprep.subr.bf16.mxu1 %v216_v36 }
  0xfa   :  { %v144_v40 = vpop.f32.mrb[5].mxu0 }
  0xfb   :  { %v575_v41 = vpop.f32.mrb[6].mxu0 }
  0xfc   :  { %v218_v42 = vpack.c.bf16 %v575_v41, %v574_v39  ;;  %v147_v43 = vpop.f32.mrb[7].mxu0  ;;  %587 = vmatpush3.bf16.msra.mxu1 %v216_v36 }
  0xfd   :  { %v217_v44 = vpack.c.bf16 %v147_v43, %v144_v40 }
  0xff   :  { %588 = vmatprep.subr.bf16.mxu1 %v217_v44 }
 0x100   :  { %589 = vmatpush3.bf16.msra.mxu1 %v217_v44 }
 0x101   :  { %v578_v45 = vpop.f32.mrb[8].mxu0  ;;  %590 = vmatprep.subr.bf16.mxu1 %v218_v42 }
 0x102   :  { %v160_v46 = vpop.f32.mrb[9].mxu0 }
 0x103   :  { %v579_v47 = vpop.f32.mrb[10].mxu0 }
 0x104   :  { %v220_v48 = vpack.c.bf16 %v579_v47, %v578_v45  ;;  %v163_v49 = vpop.f32.mrb[11].mxu0  ;;  %591 = vmatpush3.bf16.msra.mxu1 %v218_v42 }
 0x105   :  { %v219_v50 = vpack.c.bf16 %v163_v49, %v160_v46 }
 0x107   :  { %592 = vmatprep.subr.bf16.mxu1 %v219_v50 }
 0x108   :  { %593 = vmatpush3.bf16.msra.mxu1 %v219_v50 }
 0x109   :  { %v582_v51 = vpop.f32.mrb[12].mxu0  ;;  %594 = vmatprep.subr.bf16.mxu1 %v220_v48 }
 0x10a   :  { %v176_v52 = vpop.f32.mrb[13].mxu0 }
 0x10b   :  { %v583_v53 = vpop.f32.mrb[14].mxu0 }
 0x10c   :  { %v222_v54 = vpack.c.bf16 %v583_v53, %v582_v51  ;;  %v179_v55 = vpop.f32.mrb[15].mxu0  ;;  %595 = vmatpush3.bf16.msra.mxu1 %v220_v48 }
 0x10d   :  { %v221_v56 = vpack.c.bf16 %v179_v55, %v176_v52 }
 0x10f   :  { %596 = vmatprep.subr.bf16.mxu1 %v221_v56 }
 0x110   :  { %597 = vmatpush3.bf16.msra.mxu1 %v221_v56 }
 0x111   :  { %598 = vmatprep.subr.bf16.mxu1 %v222_v54 }
 0x114   :  { %599 = vmatpush3.bf16.msra.mxu1 %v222_v54 }
 0x117   :  { %601 = vmatmul.mubr.bf16.vlgmr.msra.gmra.mrb[0].mxu1 %v208_v61  ;;  %v332_v61 = vld [vmem:[#allocation2 + $0x28] sm:$0xff] }
 0x118   :  { %604 = vmatprep.mubr.bf16.mxu1 %v209_v62  ;;  %v344_v62 = vpack.c.bf16 %v330_v59, %v329_v58  ;;  %v345_v63 = vpack.c.bf16 %v332_v61, %v331_v60 }
 0x11f   :  { %605 = vmatmul.mubr.bf16.gmra.mrb[4].mxu1 %v210_v3  ;;  %v336_v3 = vld [vmem:[#allocation2 + $0x48] sm:$0xff] }
 0x120   :  { %608 = vmatprep.mubr.bf16.mxu1 %v211_v4  ;;  %v346_v4 = vpack.c.bf16 %v334_v1, %v333_v0  ;;  %v347_v5 = vpack.c.bf16 %v336_v3, %v335_v2 }
 0x127   :  { %609 = vmatmul.mubr.bf16.gmra.mrb[8].mxu1 %v212_v9  ;;  %v340_v9 = vld [vmem:[#allocation2 + $0x68] sm:$0xff] }
 0x128   :  { %612 = vmatprep.mubr.bf16.mxu1 %v213_v10  ;;  %v348_v10 = vpack.c.bf16 %v338_v7, %v337_v6  ;;  %v349_v11 = vpack.c.bf16 %v340_v9, %v339_v8 }
 0x12f   :  { %613 = vmatmul.mubr.bf16.gmra.mrb[12].mxu1 %v214_v13  ;;  %v342_v13 = vld [vmem:[#allocation2 + $0x78] sm:$0xff] }
 0x130   :  { %v350_v14 = vpack.c.bf16 %v342_v13, %v341_v12 }
 0x1ea   :  { %v602_v17 = vpop.f32.mrb[0].mxu1 }
 0x1eb   :  { %v264_v19 = vpop.f32.mrb[1].mxu1  ;;  %v273_v21 = vadd.f32 %v602_v17, %v520_v18 }
 0x1ec   :  { %v603_v20 = vpop.f32.mrb[2].mxu1  ;;  %v265_v24 = vadd.f32 %v520_v18, %v264_v19 }
 0x1ed   :  { %v276_v22 = vadd.f32 %v603_v20, %v520_v18  ;;  %v267_v23 = vpop.f32.mrb[3].mxu1 }
 0x1ee   :  { %v268_v25 = vadd.f32 %v520_v18, %v267_v23 }
 0x1ef   :  { %v352_v26 = vpack.c.bf16 %v276_v22, %v273_v21 }
 0x1f0   :  { %v351_v27 = vpack.c.bf16 %v268_v25, %v265_v24 }
 0x1f2   :  { %v606_v28 = vpop.f32.mrb[4].mxu1  ;;  %616 = vmatprep.subr.bf16.mxu0 %v351_v27 }
 0x1f3   :  { %v280_v29 = vpop.f32.mrb[5].mxu1  ;;  %617 = vmatpush3.bf16.msra.mxu0 %v351_v27  ;;  %v289_v31 = vadd.f32 %v606_v28, %v520_v18 }
 0x1f4   :  { %v607_v30 = vpop.f32.mrb[6].mxu1  ;;  %618 = vmatprep.subr.bf16.mxu0 %v352_v26  ;;  %v281_v34 = vadd.f32 %v520_v18, %v280_v29 }
 0x1f5   :  { %v292_v32 = vadd.f32 %v607_v30, %v520_v18  ;;  %v283_v33 = vpop.f32.mrb[7].mxu1 }
 0x1f6   :  { %v284_v35 = vadd.f32 %v520_v18, %v283_v33 }
 0x1f7   :  { %v354_v36 = vpack.c.bf16 %v292_v32, %v289_v31  ;;  %619 = vmatpush3.bf16.msra.mxu0 %v352_v26 }
 0x1f8   :  { %v353_v37 = vpack.c.bf16 %v284_v35, %v281_v34 }
 0x1fa   :  { %v610_v38 = vpop.f32.mrb[8].mxu1  ;;  %620 = vmatprep.subr.bf16.mxu0 %v353_v37 }
 0x1fb   :  { %v296_v39 = vpop.f32.mrb[9].mxu1  ;;  %621 = vmatpush3.bf16.msra.mxu0 %v353_v37  ;;  %v305_v41 = vadd.f32 %v610_v38, %v520_v18 }
 0x1fc   :  { %v611_v40 = vpop.f32.mrb[10].mxu1  ;;  %622 = vmatprep.subr.bf16.mxu0 %v354_v36  ;;  %v297_v44 = vadd.f32 %v520_v18, %v296_v39 }
 0x1fd   :  { %v308_v42 = vadd.f32 %v611_v40, %v520_v18  ;;  %v299_v43 = vpop.f32.mrb[11].mxu1 }
 0x1fe   :  { %v300_v45 = vadd.f32 %v520_v18, %v299_v43 }
 0x1ff   :  { %v356_v46 = vpack.c.bf16 %v308_v42, %v305_v41  ;;  %623 = vmatpush3.bf16.msra.mxu0 %v354_v36 }
 0x200   :  { %v355_v47 = vpack.c.bf16 %v300_v45, %v297_v44 }
 0x202   :  { %v614_v48 = vpop.f32.mrb[12].mxu1  ;;  %624 = vmatprep.subr.bf16.mxu0 %v355_v47 }
 0x203   :  { %v312_v49 = vpop.f32.mrb[13].mxu1  ;;  %625 = vmatpush3.bf16.msra.mxu0 %v355_v47  ;;  %v321_v51 = vadd.f32 %v614_v48, %v520_v18 }
 0x204   :  { %v615_v50 = vpop.f32.mrb[14].mxu1  ;;  %626 = vmatprep.subr.bf16.mxu0 %v356_v46  ;;  %v313_v54 = vadd.f32 %v520_v18, %v312_v49 }
 0x205   :  { %v324_v52 = vadd.f32 %v615_v50, %v520_v18  ;;  %v315_v53 = vpop.f32.mrb[15].mxu1 }
 0x206   :  { %v316_v55 = vadd.f32 %v520_v18, %v315_v53 }
 0x207   :  { %v358_v56 = vpack.c.bf16 %v324_v52, %v321_v51  ;;  %627 = vmatpush3.bf16.msra.mxu0 %v356_v46 }
 0x208   :  { %v357_v57 = vpack.c.bf16 %v316_v55, %v313_v54 }
 0x20a   :  { %628 = vmatprep.subr.bf16.mxu0 %v357_v57 }
 0x20b   :  { %629 = vmatpush3.bf16.msra.mxu0 %v357_v57 }
 0x20c   :  { %630 = vmatprep.subr.bf16.mxu0 %v358_v56 }
 0x20f   :  { %631 = vmatpush3.bf16.msra.mxu0 %v358_v56 }
 0x212   :  { %633 = vmatmul.mubr.bf16.vlgmr.msra.gmra.mrb[16].mxu0 %v344_v62 }
 0x213   :  { %636 = vmatprep.mubr.bf16.mxu0 %v345_v63 }
 0x21a   :  { %637 = vmatmul.mubr.bf16.gmra.mrb[20].mxu0 %v346_v4 }
 0x21b   :  { %640 = vmatprep.mubr.bf16.mxu0 %v347_v5 }
 0x222   :  { %641 = vmatmul.mubr.bf16.gmra.mrb[24].mxu0 %v348_v10 }
 0x223   :  { %644 = vmatprep.mubr.bf16.mxu0 %v349_v11 }
 0x22a   :  { %645 = vmatmul.mubr.bf16.gmra.mrb[28].mxu0 %v350_v14 }
 0x2e5   :  { %v634_v16 = vpop.f32.mrb[16].mxu0 }
 0x2e6   :  { %v409_v17 = vadd.f32 %v634_v16, %v521_v15  ;;  %v400_v18 = vpop.f32.mrb[17].mxu0 }
 0x2e7   :  { %v401_v19 = vadd.f32 %v521_v15, %v400_v18  ;;  %v635_v20 = vpop.f32.mrb[18].mxu0 }
 0x2e8   :  { %v465_v21 = vmax.f32 %v409_v17, 0.0  ;;  %v412_v22 = vadd.f32 %v635_v20, %v521_v15  ;;  %v403_v23 = vpop.f32.mrb[19].mxu0 }
 0x2e9   :  { %v463_v24 = vmax.f32 %v401_v19, 0.0  ;;  %v404_v25 = vadd.f32 %v521_v15, %v403_v23 }
 0x2ea   :  { %481 = vst [vmem:[#allocation5 + $0x10] sm:$0xff] %v465_v21  ;;  %v466_v26 = vmax.f32 %v412_v22, 0.0 }
 0x2eb   :  { %479 = vst [vmem:[#allocation5] sm:$0xff] %v463_v24  ;;  %v464_v27 = vmax.f32 %v404_v25, 0.0 }
 0x2ec   :  { %482 = vst [vmem:[#allocation5 + $0x18] sm:$0xff] %v466_v26 }
 0x2ed   :  { %480 = vst [vmem:[#allocation5 + $0x8] sm:$0xff] %v464_v27  ;;  %v638_v28 = vpop.f32.mrb[20].mxu0 }
 0x2ee   :  { %v425_v29 = vadd.f32 %v638_v28, %v521_v15  ;;  %v416_v30 = vpop.f32.mrb[21].mxu0 }
 0x2ef   :  { %v417_v31 = vadd.f32 %v521_v15, %v416_v30  ;;  %v639_v32 = vpop.f32.mrb[22].mxu0 }
 0x2f0   :  { %v469_v33 = vmax.f32 %v425_v29, 0.0  ;;  %v428_v34 = vadd.f32 %v639_v32, %v521_v15  ;;  %v419_v35 = vpop.f32.mrb[23].mxu0 }
 0x2f1   :  { %v467_v36 = vmax.f32 %v417_v31, 0.0  ;;  %v420_v37 = vadd.f32 %v521_v15, %v419_v35 }
 0x2f2   :  { %485 = vst [vmem:[#allocation5 + $0x30] sm:$0xff] %v469_v33  ;;  %v470_v38 = vmax.f32 %v428_v34, 0.0 }
 0x2f3   :  { %483 = vst [vmem:[#allocation5 + $0x20] sm:$0xff] %v467_v36  ;;  %v468_v39 = vmax.f32 %v420_v37, 0.0 }
 0x2f4   :  { %486 = vst [vmem:[#allocation5 + $0x38] sm:$0xff] %v470_v38 }
 0x2f5   :  { %484 = vst [vmem:[#allocation5 + $0x28] sm:$0xff] %v468_v39  ;;  %v642_v40 = vpop.f32.mrb[24].mxu0 }
 0x2f6   :  { %v441_v41 = vadd.f32 %v642_v40, %v521_v15  ;;  %v432_v42 = vpop.f32.mrb[25].mxu0 }
 0x2f7   :  { %v433_v43 = vadd.f32 %v521_v15, %v432_v42  ;;  %v643_v44 = vpop.f32.mrb[26].mxu0 }
 0x2f8   :  { %v473_v45 = vmax.f32 %v441_v41, 0.0  ;;  %v444_v46 = vadd.f32 %v643_v44, %v521_v15  ;;  %v435_v47 = vpop.f32.mrb[27].mxu0 }
 0x2f9   :  { %v471_v48 = vmax.f32 %v433_v43, 0.0  ;;  %v436_v49 = vadd.f32 %v521_v15, %v435_v47 }
 0x2fa   :  { %489 = vst [vmem:[#allocation5 + $0x50] sm:$0xff] %v473_v45  ;;  %v474_v50 = vmax.f32 %v444_v46, 0.0 }
 0x2fb   :  { %487 = vst [vmem:[#allocation5 + $0x40] sm:$0xff] %v471_v48  ;;  %v472_v51 = vmax.f32 %v436_v49, 0.0 }
 0x2fc   :  { %490 = vst [vmem:[#allocation5 + $0x58] sm:$0xff] %v474_v50 }
 0x2fd   :  { %488 = vst [vmem:[#allocation5 + $0x48] sm:$0xff] %v472_v51  ;;  %v646_v52 = vpop.f32.mrb[28].mxu0 }
 0x2fe   :  { %v457_v53 = vadd.f32 %v646_v52, %v521_v15  ;;  %v448_v54 = vpop.f32.mrb[29].mxu0 }
 0x2ff   :  { %v449_v55 = vadd.f32 %v521_v15, %v448_v54  ;;  %v647_v56 = vpop.f32.mrb[30].mxu0 }
 0x300   :  { %v477_v57 = vmax.f32 %v457_v53, 0.0  ;;  %v460_v58 = vadd.f32 %v647_v56, %v521_v15  ;;  %v451_v59 = vpop.f32.mrb[31].mxu0 }
 0x301   :  { %v475_v60 = vmax.f32 %v449_v55, 0.0  ;;  %v452_v61 = vadd.f32 %v521_v15, %v451_v59 }
 0x302   :  { %493 = vst [vmem:[#allocation5 + $0x70] sm:$0xff] %v477_v57  ;;  %v478_v62 = vmax.f32 %v460_v58, 0.0 }
 0x303   :  { %491 = vst [vmem:[#allocation5 + $0x60] sm:$0xff] %v475_v60  ;;  %v476_v63 = vmax.f32 %v452_v61, 0.0 }
 0x304   :  { %494 = vst [vmem:[#allocation5 + $0x78] sm:$0xff] %v478_v62 }
 0x305   :  { %492 = vst [vmem:[#allocation5 + $0x68] sm:$0xff] %v476_v63 }
 0x306   :  { %685 = shalt.err (!%p682_p12)
}
 0x307   :  { %s686_s15 = scalar_lea.hbm %s897_s6, 2048 }
 0x308   :  { %p687_p13 = scmp.ne.s32.totalorder %s897_s6, %s686_s15  ;;  %p690_p0 = scmp.lt.u32.totalorder %s686_s15, %s897_s6 }
 0x30a   :  { %p692_p1 = pnand %p690_p0, %p687_p13 }
 0x30c   :  { %695 = shalt.err (!%p692_p1)
}
 0x30d   :  { %506 = dma.vmem_to_hbm [thread:$0]  %s501_s11, 2048, %s897_s6, [#allocation4], %s701_s7, %s701_s7, %s702_s8  }
 0x30e   :  { %698 = dma.done.wait [#allocation4], 2048  }
 0x30f   :  { %699 = vsyncadd [#allocation4], 4294965248 }
 0x310   :  { %510 = vsyncpa [#allocation3], 1 }
 0x311   :  { %511 = vsyncpa [#allocation4], 1 }

</bundles_post_ra>
